<compile_context>
chip_gen: v5e
topology: v5e:2x2
jax: 0.10.0
libtpu: 0.0.40
codegen_flags: <defaults>
</compile_context>

<pallas_src>
import jax
import jax.numpy as jnp
from jax import lax
from jax.experimental import pallas as pl
from jax.experimental.pallas import tpu as pltpu

MAX_NEWTON_ITERS = 25     # safety cap (reference LBFGS uses max_iter=100)
NEWTON_TOL = 1e-6         # stop when max |Newton step| (alpha-scaled) < tol
_NOMINAL_ITERS = 8        # advisory cost-estimate only


def _cdiv(a, b):
    return (a + b - 1) // b


def _round_up(a, m):
    return _cdiv(a, m) * m


def _tpu_vmem_and_cores():
    """(VMEM bytes, TensorCores per device); conservative defaults on failure."""
    vmem_bytes = 64 << 20     # v7x-safe default
    num_cores = 2             # default to the multi-step split (cheap if 1 TC)
    try:
        info = pltpu.get_tpu_info()
        vmem_bytes = int(getattr(info, "vmem_capacity_bytes", vmem_bytes))
        for attr in ("num_cores", "tensorcore_count", "num_tensorcores", "core_count"):
            val = getattr(info, attr, None)
            if val is not None:
                num_cores = int(val)
                break
    except Exception:
        pass
    return vmem_bytes, num_cores


_VMEM_BYTES, _NUM_CORES = _tpu_vmem_and_cores()


def _choose_tile_n(n, hw, in_itemsize):
    """Rows per grid step: fill VMEM, multiple of 8, and on multi-TensorCore
    chips aim for >= 2 steps per core (even total); single-TC chips get no
    forced split (pure per-step overhead there)."""
    # Per-row footprint: double-buffered input tile + ~6 f32 temporaries
    # (v, d, r and the reduction operands) the compiler may materialize.
    per_row = 2 * hw * in_itemsize + 6 * hw * 4
    budget = min(max(_VMEM_BYTES // 2 - (4 << 20), 8 << 20), 56 << 20)
    row_cap = 2048 if _VMEM_BYTES >= (96 << 20) else 1024
    cap = max(8, min((budget // per_row) // 8 * 8, row_cap))

    n8 = _round_up(n, 8)
    tile = min(n8, cap)
    if _NUM_CORES >= 2 and n8 > 8:
        steps = max(2 * _NUM_CORES, _cdiv(n8, cap))
        tile = min(cap, max(8, _round_up(_cdiv(n8, steps), 8)))
        steps = _cdiv(n, tile)
        if steps > 1 and steps % 2 == 1:          # balance the two cores
            tile_alt = max(8, _round_up(_cdiv(n8, steps + 1), 8))
            if _cdiv(n, tile_alt) % 2 == 0:
                tile = tile_alt
    return tile


def _make_kernel(n_rows, tile_n):
    def kernel(alpha_ref, x_ref, y_ref):
        # alpha_ref : SMEM (1,) f32          -- the module's `alpha` buffer
        # x_ref     : VMEM (tile_n, HW)      -- input rows (input dtype)
        # y_ref     : VMEM (tile_n, 1)       -- pooled value per row (input dtype)
        alpha = alpha_ref[0]
        x = x_ref[...].astype(jnp.float32)
        v = x * (1.0 / alpha)                        # alpha-scaled data (one pass)

        u = jnp.mean(v, axis=-1, keepdims=True)      # convex-branch mean init
        vmin = jnp.min(v, axis=-1, keepdims=True)    # minimiser bracket
        vmax = jnp.max(v, axis=-1, keepdims=True)

        # The last grid block may be ragged: rows >= n_rows hold garbage. Rows
        # are independent; garbage rows are masked out of the convergence test
        # and their outputs are discarded on write-back.
        valid = jnp.minimum(n_rows - pl.program_id(0) * tile_n, tile_n)
        row_ok = lax.broadcasted_iota(jnp.int32, (tile_n, 1), 0) < valid

        def cond(carry):
            it, _, dmax = carry
            return jnp.logical_and(it < MAX_NEWTON_ITERS, dmax > NEWTON_TOL)

        def body(carry):
            it, u_cur, _ = carry
            d = u_cur - v                                      # (tile_n, HW)
            r = lax.rsqrt(1.0 + d * d)                         # EUP slot
            g = jnp.sum(d * r, axis=-1, keepdims=True)         # sum phi' / alpha
            h = jnp.sum(r * r * r, axis=-1, keepdims=True)     # sum phi''
            h = jnp.maximum(h, 1e-30)                          # guard 0/0 -> NaN
            u_new = jnp.clip(u_cur - g / h, vmin, vmax)        # safeguarded Newton
            delta = jnp.where(row_ok, jnp.abs(u_new - u_cur), 0.0)
            return it + 1, u_new, jnp.max(delta)

        _, u, _ = lax.while_loop(cond, body,
                                 (jnp.int32(0), u, jnp.float32(jnp.inf)))
        y_ref[...] = (alpha * u).astype(y_ref.dtype)

    return kernel


@jax.jit
def robust_global_pool2d(x, alpha):
    """Forward of RobustGlobalPool2d with the (convex) Pseudo-Huber penalty.

    x:     (..., H, W) float array (e.g. NCHW (B, C, H, W))
    alpha: (1,) strictly-positive float (the module's registered buffer)
    returns: x.shape[:-2], in x's dtype
    """
    # TODO(synk): non-convex penalties (Welsch / truncated quadratic) need the
    # reference's mean-vs-median dual-start branch; only Pseudo-Huber (convex)
    # is implemented here.
    lead = x.shape[:-2]
    H, W = x.shape[-2], x.shape[-1]
    n = 1
    for d in lead:
        n *= d
    hw = H * W

    # Keep bf16/f16 narrow in HBM; the kernel upcasts to f32 for the solve.
    if not any(x.dtype == t for t in (jnp.bfloat16, jnp.float16, jnp.float32)):
        x = x.astype(jnp.float32)
    x_flat = x.reshape(n, hw)
    out_dtype = x_flat.dtype
    alpha_smem = jnp.asarray(alpha, jnp.float32).reshape(-1)[:1]

    in_itemsize = x_flat.dtype.itemsize
    tile_n = _choose_tile_n(n, hw, in_itemsize)
    grid = (_cdiv(n, tile_n),)

    vmem_need = 2 * tile_n * hw * in_itemsize + 7 * tile_n * hw * 4 + (2 << 20)
    vmem_limit = int(min(_VMEM_BYTES - (8 << 20), max(32 << 20, vmem_need)))

    cost = pl.CostEstimate(
        flops=_NOMINAL_ITERS * 8 * n * hw,
        transcendentals=_NOMINAL_ITERS * n * hw,
        bytes_accessed=in_itemsize * n * hw + out_dtype.itemsize * n + 4,
    )

    y_flat = pl.pallas_call(
        _make_kernel(n, tile_n),
        out_shape=jax.ShapeDtypeStruct((n, 1), out_dtype),
        grid_spec=pl.GridSpec(
            grid=grid,
            in_specs=[
                pl.BlockSpec(memory_space=pltpu.SMEM),           # alpha scalar
                pl.BlockSpec((tile_n, hw), lambda i: (i, 0)),    # input rows
            ],
            out_specs=pl.BlockSpec((tile_n, 1), lambda i: (i, 0)),
        ),
        compiler_params=pltpu.CompilerParams(
            dimension_semantics=("parallel",),
            vmem_limit_bytes=vmem_limit,
        ),
        cost_estimate=cost,
    )(alpha_smem, x_flat)

    return y_flat.reshape(lead)


def _pseudo_huber_grad(y, x_flat, alpha):
    """Reference gradient of the pooled objective (convergence sanity check)."""
    z = y[:, None].astype(jnp.float32) - x_flat.astype(jnp.float32)
    return jnp.sum(z / jnp.sqrt(1.0 + (z / alpha) ** 2), axis=-1)


if __name__ == "__main__":
    key = jax.random.PRNGKey(0)

    # Primary check: the module's NCHW shape with outliers (robust pool != mean).
    B, C, H, W = 2, 4, 16, 16
    x = jax.random.normal(key, (B, C, H, W), dtype=jnp.float32)
    x = x.at[:, :, 0, 0].set(25.0)
    alpha = jnp.array([1.0], dtype=jnp.float32)   # module buffer `alpha`

    y = jax.block_until_ready(robust_global_pool2d(x, alpha))
    assert y.shape == (B, C), f"unexpected output shape {y.shape}"
    g = _pseudo_huber_grad(y.reshape(-1), x.reshape(B * C, H * W), alpha[0])
    gmax = float(jnp.max(jnp.abs(g)))
    assert gmax < 1e-3, f"not converged, |grad|={gmax}"

    # Secondary check: ragged row count (n % 8 != 0) and a smaller alpha.
    B2, C2 = 3, 3
    x2 = jax.random.normal(jax.random.PRNGKey(1), (B2, C2, H, W), jnp.float32)
    x2 = x2.at[:, :, 0, 0].set(-17.0)
    alpha2 = jnp.array([0.3], dtype=jnp.float32)
    y2 = jax.block_until_ready(robust_global_pool2d(x2, alpha2))
    assert y2.shape == (B2, C2), f"unexpected output shape {y2.shape}"
    g2 = _pseudo_huber_grad(y2.reshape(-1), x2.reshape(B2 * C2, H * W), alpha2[0])
    gmax2 = float(jnp.max(jnp.abs(g2)))
    assert gmax2 < 1e-3, f"ragged/small-alpha case not converged, |grad|={gmax2}"

    print("KERNEL_OK")
</pallas_src>

<mosaic_0001>
module attributes {stable_mosaic.version = 11 : i64} {
  func.func @kernel(%arg0: i32, %arg1: memref<1xf32, #tpu.memory_space<smem>>, %arg2: memref<8x256xf32, #tpu.memory_space<vmem>>, %arg3: memref<8x1xf32, #tpu.memory_space<vmem>>) attributes {dimension_semantics = [#tpu.dimension_semantics<parallel>], iteration_bounds = array<i64: 1>, scalar_prefetch = 0 : i64, scratch_operands = 0 : i64, tpu.core_type = #tpu.core_type<tc>, window_params = [{transform_indices = @transform_0, window_bounds = array<i64: 1>}, {transform_indices = @transform_1, window_bounds = array<i64: 8, 256>}, {transform_indices = @transform_2, window_bounds = array<i64: 8, 1>}]} {
    %c0 = arith.constant 0 : index
    %0 = memref.load %arg1[%c0] : memref<1xf32, #tpu.memory_space<smem>>
    %c0_0 = arith.constant 0 : index
    %c0_1 = arith.constant 0 : index
    %1 = vector.load %arg2[%c0_0, %c0_1] : memref<8x256xf32, #tpu.memory_space<vmem>>, vector<8x256xf32>
    %cst = arith.constant 1.000000e+00 : f32
    %2 = arith.divf %cst, %0 : f32
    %3 = vector.broadcast %2 : f32 to vector<8x256xf32>
    %4 = arith.mulf %1, %3 : vector<8x256xf32>
    %cst_2 = arith.constant dense<0.000000e+00> : vector<8xf32>
    %5 = vector.multi_reduction <add>, %4, %cst_2 [1] : vector<8x256xf32> to vector<8xf32>
    %6 = vector.shape_cast %5 : vector<8xf32> to vector<8x1xf32>
    %cst_3 = arith.constant 2.560000e+02 : f32
    %7 = vector.broadcast %cst_3 : f32 to vector<8x1xf32>
    %8 = arith.divf %6, %7 : vector<8x1xf32>
    %cst_4 = arith.constant dense<0x7F800000> : vector<8xf32>
    %9 = vector.multi_reduction <minimumf>, %4, %cst_4 [1] : vector<8x256xf32> to vector<8xf32>
    %10 = vector.shape_cast %9 : vector<8xf32> to vector<8x1xf32>
    %cst_5 = arith.constant dense<0xFF800000> : vector<8xf32>
    %11 = vector.multi_reduction <maximumf>, %4, %cst_5 [1] : vector<8x256xf32> to vector<8xf32>
    %12 = vector.shape_cast %11 : vector<8xf32> to vector<8x1xf32>
    %c8_i32 = arith.constant 8 : i32
    %13 = arith.muli %arg0, %c8_i32 : i32
    %c8_i32_6 = arith.constant 8 : i32
    %14 = arith.subi %c8_i32_6, %13 : i32
    %c8_i32_7 = arith.constant 8 : i32
    %15 = arith.minsi %14, %c8_i32_7 : i32
    %16 = tpu.iota {dimensions = array<i32: 0>} : vector<8x1xi32>
    %17 = vector.broadcast %15 : i32 to vector<8x1xi32>
    %18 = arith.cmpi slt, %16, %17 : vector<8x1xi32>
    %c0_i32 = arith.constant 0 : i32
    %cst_8 = arith.constant 0x7F800000 : f32
    %19:3 = scf.while (%arg4 = %c0_i32, %arg5 = %8, %arg6 = %cst_8) : (i32, vector<8x1xf32>, f32) -> (i32, vector<8x1xf32>, f32) {
      %c25_i32 = arith.constant 25 : i32
      %23 = arith.cmpi slt, %arg4, %c25_i32 : i32
      %cst_11 = arith.constant 9.99999997E-7 : f32
      %24 = arith.cmpf ogt, %arg6, %cst_11 : f32
      %25 = arith.andi %23, %24 : i1
      scf.condition(%25) %arg4, %arg5, %arg6 : i32, vector<8x1xf32>, f32
    } do {
    ^bb0(%arg4: i32, %arg5: vector<8x1xf32>, %arg6: f32):
      %23 = vector.broadcast %arg5 : vector<8x1xf32> to vector<8x256xf32>
      %24 = arith.subf %23, %4 : vector<8x256xf32>
      %25 = arith.mulf %24, %24 : vector<8x256xf32>
      %cst_11 = arith.constant 1.000000e+00 : f32
      %26 = vector.broadcast %cst_11 : f32 to vector<8x256xf32>
      %27 = arith.addf %26, %25 : vector<8x256xf32>
      %28 = math.rsqrt %27 : vector<8x256xf32>
      %29 = arith.mulf %24, %28 : vector<8x256xf32>
      %cst_12 = arith.constant dense<0.000000e+00> : vector<8xf32>
      %30 = vector.multi_reduction <add>, %29, %cst_12 [1] : vector<8x256xf32> to vector<8xf32>
      %31 = vector.shape_cast %30 : vector<8xf32> to vector<8x1xf32>
      %32 = arith.mulf %28, %28 : vector<8x256xf32>
      %33 = arith.mulf %32, %28 : vector<8x256xf32>
      %cst_13 = arith.constant dense<0.000000e+00> : vector<8xf32>
      %34 = vector.multi_reduction <add>, %33, %cst_13 [1] : vector<8x256xf32> to vector<8xf32>
      %35 = vector.shape_cast %34 : vector<8xf32> to vector<8x1xf32>
      %cst_14 = arith.constant 1.000000e-30 : f32
      %36 = vector.broadcast %cst_14 : f32 to vector<8x1xf32>
      %37 = arith.maximumf %35, %36 : vector<8x1xf32>
      %38 = arith.divf %31, %37 : vector<8x1xf32>
      %39 = arith.subf %arg5, %38 : vector<8x1xf32>
      %40 = arith.maximumf %10, %39 : vector<8x1xf32>
      %41 = arith.minimumf %12, %40 : vector<8x1xf32>
      %42 = arith.subf %41, %arg5 : vector<8x1xf32>
      %43 = math.absf %42 : vector<8x1xf32>
      %cst_15 = arith.constant 0.000000e+00 : f32
      %44 = vector.broadcast %cst_15 : f32 to vector<8x1xf32>
      %45 = arith.select %18, %43, %44 : vector<8x1xi1>, vector<8x1xf32>
      %c1_i32 = arith.constant 1 : i32
      %46 = arith.addi %arg4, %c1_i32 : i32
      %47 = vector.shape_cast %45 : vector<8x1xf32> to vector<1x8x1xf32>
      %cst_16 = arith.constant dense<0xFF800000> : vector<1xf32>
      %48 = vector.multi_reduction <maximumf>, %47, %cst_16 [1, 2] : vector<1x8x1xf32> to vector<1xf32>
      %49 = vector.shape_cast %48 : vector<1xf32> to vector<1x1x1xf32>
      %50 = vector.extract %49[0, 0, 0] : f32 from vector<1x1x1xf32>
      scf.yield %46, %41, %50 : i32, vector<8x1xf32>, f32
    }
    %20 = vector.broadcast %0 : f32 to vector<8x1xf32>
    %21 = arith.mulf %20, %19#1 : vector<8x1xf32>
    %c0_9 = arith.constant 0 : index
    %c0_10 = arith.constant 0 : index
    %22 = vector.load %arg3[%c0_9, %c0_10] : memref<8x1xf32, #tpu.memory_space<vmem>>, vector<8x1xf32>
    tpu.vector_store %arg3[%c0_9, %c0_10], %21 {strides = array<i32>} : memref<8x1xf32, #tpu.memory_space<vmem>>, vector<8x1xf32>,
    return
  }
  func.func @transform_0(%arg0: i32) -> i32 {
    %c0_i32 = arith.constant 0 : i32
    %c0_i32_0 = arith.constant 0 : i32
    return %c0_i32 : i32
  }
  func.func @transform_1(%arg0: i32) -> (i32, i32) {
    %c0_i32 = arith.constant 0 : i32
    %c0_i32_0 = arith.constant 0 : i32
    return %arg0, %c0_i32 : i32, i32
  }
  func.func @transform_2(%arg0: i32) -> (i32, i32) {
    %c0_i32 = arith.constant 0 : i32
    %c0_i32_0 = arith.constant 0 : i32
    return %arg0, %c0_i32 : i32, i32
  }
}

</mosaic_0001>

<bundles_post_ra>
// kernel: robust_global_pool2d.1
= control target key start
LH: loop header
LB: loop body
LE: loop exit
PB: predicated region body
PF: predicated region fallthrough
CT: control target
= control target key end

     0   :  { %v203_v19 = vmov 256.0   ;;  %s280_s0 = inlined_call_operand.<no memory space> [shape: f32[1], index: 0, kind: input, shape index: {}]   ;;  %s281_s2 = inlined_call_operand.vmem [shape: f32[8,1], index: 2, kind: output, shape index: {}]   ;;  %s282_s1 = inlined_call_operand.vmem [shape: f32[8,256], index: 1, kind: input, shape index: {}]  }
   0x1   :  { %v222_v0 = vstv %s280_s0  ;;  %v13_v11 = vld [vmem:[%s282_s1] sm:$0xff]  ;;  %v14_v12 = vld [vmem:[%s282_s1 + $0x8] sm:$0xff]  ;;  %s251_s1 = smov 0  }
   0x2   :  { %177 = vrcp.f32 %v222_v0  ;;  %v27_v3 = vand.u32 2147483648, %v222_v0  ;;  %vm21_vm0 = vweird.f32 %v222_v0  ;;  %v25_v5 = vand.u32 2147483647, %v222_v0 }
   0x3   :  { %179 = vrcp.f32 %v203_v19 }
   0x4   :  { %v28_v7 = vor.u32 1.1754944e-38, %v27_v3  ;;  %vm26_vm3 = vcmp.eq.f32.partialorder %v25_v5, 8.507059e+37 }
   0x8   :  { %v178_v1 = vpop.eup %177 }
   0x9   :  { %v17_v2 = vmul.f32 %v178_v1, %v222_v0  ;;  %vm22_vm1 = vweird.f32 %v178_v1  ;;  %v180_v20 = vpop.eup %179 }
   0xa   :  { %vm23_vm2 = vmor %vm21_vm0, %vm22_vm1  ;;  %v38_v21 = vmul.f32 256.0, %v180_v20  ;;  %vm42_vm4 = vweird.f32 %v180_v20 }
   0xb   :  { %v18_v4 = vsub.f32 1.0, %v17_v2 }
   0xc   :  { %v39_v22 = vsub.f32 1.0, %v38_v21 }
   0xd   :  { %v19_v6 = vmul.f32 %v178_v1, %v18_v4 }
   0xe   :  { %v40_v23 = vmul.f32 %v180_v20, %v39_v22 }
   0xf   :  { %v20_v8 = vadd.f32 %v178_v1, %v19_v6 }
  0x10   :  { %v41_v24 = vadd.f32 %v180_v20, %v40_v23 }
  0x11   :  { %v24_v9 = vsel %vm23_vm2, %v178_v1, %v20_v8 }
  0x12   :  { %v29_v10 = vsel %vm26_vm3, %v28_v7, %v24_v9  ;;  %v43_v25 = vsel %vm42_vm4, %v180_v20, %v41_v24 }
  0x13   :  { %156 = vpush %v29_v10 }
  0x44   :  { %s157_s14 = spop %156 }
  0x45   :  { %v31_v13 = vstv %s157_s14 }
  0x46   :  { %v235_v14 = vmul.f32 %v31_v13, %v13_v11  ;;  %v237_v15 = vmul.f32 %v31_v13, %v14_v12 }
  0x48   :  { %v48_v16 = vmax.f32 %v235_v14, %v237_v15  ;;  %v34_v17 = vadd.f32 %v237_v15, %v235_v14  ;;  %v45_v18 = vmin.f32 %v235_v14, %v237_v15 }
  0x4a   :  { %49 = vmax.xlane.f32.xlu1 %v48_v16  ;;  %35 = vadd.xlane.f32.xlu0 %v34_v17 }
  0x52   :  { %46 = vmin.xlane.f32.xlu0 %v45_v18 }
  0xbd   :  { %v245_v26 = vpop.xlane.xlu1 %49  ;;  %v36_v27 = vpop.xlane.xlu0 %35 }
  0xbe   :  { %v44_v28 = vmul.f32 %v43_v25, %v36_v27  }
  0xc5   :  { %v247_v29 = vpop.xlane.xlu0 %46 }
  0xc6 LB: > { %v69_v30 = vsub.f32 %v197_v28, %v235_v14  ;;  %v70_v31 = vsub.f32 %v197_v28, %v237_v15  ;;  %s129_s15 = sadd.s32 1, %s201_s1   ;;  %s201_s1 = sphi %s251_s1, %s284_s1   ;;  %v197_v28 = vphi %v44_v28, %v283_v28  }
  0xc7   : > { %p63_p0 = scmp.lt.s32.totalorder %s129_s15, 25  ;;  %s284_s1 = smov %s129_s15 }
  0xc8   : > { %v71_v32 = vmul.f32 %v69_v30, %v69_v30  ;;  %v72_v33 = vmul.f32 %v70_v31, %v70_v31 }
  0xca   : > { %v73_v34 = vadd.f32 1.0, %v71_v32  ;;  %v74_v35 = vadd.f32 1.0, %v72_v33 }
  0xcc   : > { %181 = vrsqrt.f32 %v73_v34  ;;  %vm81_vm5 = vweird.f32 %v73_v34  ;;  %vm91_vm7 = vweird.f32 %v74_v35 }
  0xcd   : > { %183 = vrsqrt.f32 %v74_v35 }
  0xd2   : > { %v182_v36 = vpop.eup %181 }
  0xd3   : > { %v184_v37 = vpop.eup %183  ;;  %v76_v38 = vmul.f32 %v182_v36, %v73_v34  ;;  %vm82_vm6 = vweird.f32 %v182_v36 }
  0xd4   : > { %v86_v39 = vmul.f32 %v184_v37, %v74_v35  ;;  %vm92_vm8 = vweird.f32 %v184_v37  ;;  %vm83_vm9 = vmor %vm81_vm5, %vm82_vm6 }
  0xd5   : > { %v77_v40 = vmul.f32 %v182_v36, %v76_v38  ;;  %vm93_vm10 = vmor %vm91_vm7, %vm92_vm8 }
  0xd6   : > { %v87_v41 = vmul.f32 %v184_v37, %v86_v39 }
  0xd7   : > { %v78_v42 = vmul.f32 0.5, %v77_v40 }
  0xd8   : > { %v88_v43 = vmul.f32 0.5, %v87_v41 }
  0xd9   : > { %v79_v44 = vsub.f32 1.5, %v78_v42 }
  0xda   : > { %v89_v45 = vsub.f32 1.5, %v88_v43 }
  0xdb   : > { %v80_v46 = vmul.f32 %v182_v36, %v79_v44 }
  0xdc   : > { %v90_v47 = vmul.f32 %v184_v37, %v89_v45 }
  0xdd   : > { %v84_v48 = vsel %vm83_vm9, %v182_v36, %v80_v46 }
  0xde   : > { %v94_v49 = vsel %vm93_vm10, %v184_v37, %v90_v47  ;;  %v100_v50 = vmul.f32 %v84_v48, %v84_v48  ;;  %v95_v55 = vmul.f32 %v84_v48, %v69_v30 }
  0xdf   : > { %v101_v51 = vmul.f32 %v94_v49, %v94_v49  ;;  %v96_v56 = vmul.f32 %v94_v49, %v70_v31 }
  0xe0   : > { %v102_v52 = vmul.f32 %v100_v50, %v84_v48 }
  0xe1   : > { %v103_v53 = vmul.f32 %v101_v51, %v94_v49  ;;  %v97_v57 = vadd.f32 %v96_v56, %v95_v55 }
  0xe3   : > { %v104_v54 = vadd.f32 %v103_v53, %v102_v52 }
  0xe5   : > { %105 = vadd.xlane.f32.xlu0 %v104_v54 }
  0xed   : > { %98 = vadd.xlane.f32.xlu0 %v97_v57 }
 0x158   : > { %v106_v58 = vpop.xlane.xlu0 %105 }
 0x159   : > { %v107_v59 = vmax.f32 %v106_v58, 1e-30 }
 0x15b   : > { %185 = vrcp.f32 %v107_v59  ;;  %v119_v63 = vand.u32 2147483648, %v107_v59  ;;  %v117_v2 = vand.u32 2147483647, %v107_v59  ;;  %vm113_vm12 = vweird.f32 %v107_v59 }
 0x15d   : > { %v120_v4 = vor.u32 1.1754944e-38, %v119_v63  ;;  %vm118_vm14 = vcmp.eq.f32.partialorder %v117_v2, 8.507059e+37 }
 0x160   : > { %v99_v5 = vpop.xlane.xlu0 %98 }
 0x161   : > { %v186_v60 = vpop.eup %185 }
 0x162   : > { %v109_v61 = vmul.f32 %v186_v60, %v107_v59  ;;  %vm114_vm11 = vweird.f32 %v186_v60 }
 0x163   : > { %vm115_vm13 = vmor %vm113_vm12, %vm114_vm11 }
 0x164   : > { %v110_v62 = vsub.f32 1.0, %v109_v61 }
 0x166   : > { %v111_v1 = vmul.f32 %v186_v60, %v110_v62 }
 0x168   : > { %v112_v3 = vadd.f32 %v186_v60, %v111_v1 }
 0x16a   : > { %v116_v6 = vsel %vm115_vm13, %v186_v60, %v112_v3 }
 0x16b   : > { %v121_v7 = vsel %vm118_vm14, %v120_v4, %v116_v6 }
 0x16c   : > { %v122_v8 = vmul.f32 %v121_v7, %v99_v5 }
 0x16e   : > { %v123_v9 = vsub.f32 %v197_v28, %v122_v8 }
 0x170   : > { %v124_v10 = vmax.f32 %v247_v29, %v123_v9 }
 0x172   : > { %v125_v11 = vmin.f32 %v245_v26, %v124_v10  }
 0x174   : > { %v126_v12 = vsub.f32 %v125_v11, %v197_v28  ;;  %v283_v28 = vmov %v125_v11 }
 0x176   : > { %v127_v13 = vand.u32 2147483647, %v126_v12 }
 0x178   : > { %v130_v16 = vrot.slane %v127_v13, 4 }
 0x17a   : > { %v131_v17 = vmax.f32 %v127_v13, %v130_v16 }
 0x17c   : > { %v132_v18 = vrot.slane %v131_v17, 2 }
 0x17e   : > { %v133_v19 = vmax.f32 %v131_v17, %v132_v18 }
 0x180   : > { %v134_v20 = vrot.slane %v133_v19, 1 }
 0x182   : > { %v135_v21 = vmax.f32 %v133_v19, %v134_v20 }
 0x184   : > { %158 = vpush %v135_v21 }
 0x1b5   : > { %s159_s16 = spop %158 }
 0x1b6   : > { %p64_p1 = scmp.gt.f32.partialorder %s159_s16, 1e-06 }
 0x1b8   : > { %p65_p2 = pnand %p64_p1, %p63_p0 }
 0x1b9   :  { %v138_v22 = vmul.f32 (%p65_p2), %v125_v11, %v222_v0  ;;  %vm139_vm15 = vcmask (%p65_p2), 7168  }
 0x1ba   :  { %68 = sbr.rel (!%p65_p2) target bundleno = 198 (0xc6), region = 35 }
 0x1bb   :  { %140 = vst.msk [vmem:[%s281_s2] sm:$0xff] (%p65_p2), %vm139_vm15, %v138_v22 }

</bundles_post_ra>
